<compile_context>
chip_gen: v5e
topology: v5e:2x2
jax: 0.10.0
libtpu: 0.0.40
codegen_flags: <defaults>
</compile_context>

<pallas_src>
import numpy as np
import jax
import jax.numpy as jnp
from jax.experimental import pallas as pl
from jax.experimental.pallas import tpu as pltpu

_VMEM_BUDGET = 12 * 1024 * 1024   # double-buffered footprint target (v5e-safe)
_MAX_SEQ_TILE = 2048              # rows-per-block cap


def _build_pe_table(dim: int, max_len: int = 500, dtype=jnp.float32) -> jnp.ndarray:
    """Deterministic sin/cos positional-encoding table, shape (1, max_len, dim).

    Built directly in the model dtype so the forward pass never re-casts it.
    """
    position = np.arange(0, max_len, dtype=np.float32)[:, None]            # (L, 1)
    div_term = np.exp(np.arange(0, dim, 2, dtype=np.float32)
                      * -(np.log(10000.0) / dim))                          # (ceil(D/2),)
    pe = np.zeros((max_len, dim), dtype=np.float32)
    pe[:, 0::2] = np.sin(position * div_term)
    pe[:, 1::2] = np.cos(position * div_term)[:, : dim // 2]               # odd-dim safe
    return jnp.asarray(pe[None, :, :], dtype=dtype)                        # (1, L, D)


def _add_pe_kernel(x_ref, pe_ref, o_ref):
    # x_ref / o_ref: (B, TS, D) block; pe_ref: (1, TS, D) block.
    # The batch broadcast happens here on the VPU, so pe is DMA'd once total.
    o_ref[...] = x_ref[...] + pe_ref[...]


def _pick_seq_tile(seq_len: int, bytes_per_row: int, itemsize: int) -> int:
    """Largest legal seq tile whose double-buffered 3-stream footprint fits VMEM."""
    # Sublane packing unit: f32 -> 8 rows, bf16 -> 16, int8 -> 32.
    unit = max(8, 32 // max(1, itemsize))
    if seq_len % 8 != 0:
        return seq_len                       # full-extent block is always legal
    round_to = unit if seq_len % unit == 0 else 8

    ts = _VMEM_BUDGET // (2 * max(1, bytes_per_row))   # x2 for double buffering
    ts = max(round_to, (ts // round_to) * round_to)
    ts = min(ts, _MAX_SEQ_TILE, seq_len)

    # Keep >=2 grid steps when splittable so v7x's two TensorCores both stream.
    if ts == seq_len and seq_len >= 2 * round_to:
        half = ((seq_len // 2 + round_to - 1) // round_to) * round_to
        ts = min(ts, half)
    return ts


def positional_encoding_forward(x: jnp.ndarray, pe: jnp.ndarray) -> jnp.ndarray:
    """x: (B, S, D); pe: (1, max_len, D). Returns x + pe[:, :S]."""
    B, S, D = x.shape
    assert S <= pe.shape[1], (
        f"sequence length {S} exceeds positional table max_len {pe.shape[1]}")

    # Static slice; no-op when S == max_len.  Cast is a no-op when the table is
    # built in the model dtype (recommended).  For a fixed S, cache this slice
    # in the caller instead of redoing it every forward.
    pe_s = pe[:, :S, :]
    if pe_s.dtype != x.dtype:
        pe_s = pe_s.astype(x.dtype)

    itemsize = jnp.dtype(x.dtype).itemsize
    bytes_per_row = (2 * B + 1) * D * itemsize       # x + out + pe per seq row/step
    TS = _pick_seq_tile(S, bytes_per_row, itemsize)
    grid = (pl.cdiv(S, TS),)

    cost = pl.CostEstimate(
        flops=B * S * D,
        transcendentals=0,
        bytes_accessed=(2 * B * S * D + S * D) * itemsize,
    )

    return pl.pallas_call(
        _add_pe_kernel,
        out_shape=jax.ShapeDtypeStruct((B, S, D), x.dtype),
        grid=grid,
        in_specs=[
            pl.BlockSpec((B, TS, D), lambda s: (0, s, 0)),   # x: all batches, one seq tile
            pl.BlockSpec((1, TS, D), lambda s: (0, s, 0)),   # pe: streamed once (S*D bytes)
        ],
        out_specs=pl.BlockSpec((B, TS, D), lambda s: (0, s, 0)),
        compiler_params=pltpu.CompilerParams(
            dimension_semantics=("parallel",),
        ),
        cost_estimate=cost,
    )(x, pe_s)


if __name__ == "__main__":
    # Small shapes consistent with the module: batch=2, seq=8, dim=32.
    B, S, D = 2, 8, 32
    MAX_LEN = 500

    key = jax.random.PRNGKey(0)
    x = jax.random.normal(key, (B, S, D), dtype=jnp.float32)

    pe = _build_pe_table(D, MAX_LEN, dtype=x.dtype)

    y = positional_encoding_forward(x, pe)
    y = jax.block_until_ready(y)

    # Reference check (plain JAX, same semantics as the PyTorch module).
    y_ref = x + pe[:, :S, :]
    np.testing.assert_allclose(np.asarray(y), np.asarray(y_ref), rtol=1e-6, atol=1e-6)

    print("KERNEL_OK")
</pallas_src>

<mosaic_0001>
module attributes {stable_mosaic.version = 11 : i64} {
  func.func @_add_pe_kernel(%arg0: i32, %arg1: memref<2x8x32xf32, #tpu.memory_space<vmem>>, %arg2: memref<1x8x32xf32, #tpu.memory_space<vmem>>, %arg3: memref<2x8x32xf32, #tpu.memory_space<vmem>>) attributes {dimension_semantics = [#tpu.dimension_semantics<parallel>], iteration_bounds = array<i64: 1>, scalar_prefetch = 0 : i64, scratch_operands = 0 : i64, tpu.core_type = #tpu.core_type<tc>, window_params = [{transform_indices = @transform_0, window_bounds = array<i64: 2, 8, 32>}, {transform_indices = @transform_1, window_bounds = array<i64: 1, 8, 32>}, {transform_indices = @transform_2, window_bounds = array<i64: 2, 8, 32>}]} {
    %c0 = arith.constant 0 : index
    %c0_0 = arith.constant 0 : index
    %c0_1 = arith.constant 0 : index
    %0 = vector.load %arg1[%c0, %c0_0, %c0_1] : memref<2x8x32xf32, #tpu.memory_space<vmem>>, vector<2x8x32xf32>
    %c0_2 = arith.constant 0 : index
    %c0_3 = arith.constant 0 : index
    %c0_4 = arith.constant 0 : index
    %1 = vector.load %arg2[%c0_2, %c0_3, %c0_4] : memref<1x8x32xf32, #tpu.memory_space<vmem>>, vector<1x8x32xf32>
    %2 = vector.broadcast %1 : vector<1x8x32xf32> to vector<2x8x32xf32>
    %3 = arith.addf %0, %2 : vector<2x8x32xf32>
    %c0_5 = arith.constant 0 : index
    %c0_6 = arith.constant 0 : index
    %c0_7 = arith.constant 0 : index
    %4 = vector.load %arg3[%c0_5, %c0_6, %c0_7] : memref<2x8x32xf32, #tpu.memory_space<vmem>>, vector<2x8x32xf32>
    tpu.vector_store %arg3[%c0_5, %c0_6, %c0_7], %3 {strides = array<i32>} : memref<2x8x32xf32, #tpu.memory_space<vmem>>, vector<2x8x32xf32>,
    return
  }
  func.func @transform_0(%arg0: i32) -> (i32, i32, i32) {
    %c0_i32 = arith.constant 0 : i32
    %c0_i32_0 = arith.constant 0 : i32
    %c0_i32_1 = arith.constant 0 : i32
    return %c0_i32, %arg0, %c0_i32_0 : i32, i32, i32
  }
  func.func @transform_1(%arg0: i32) -> (i32, i32, i32) {
    %c0_i32 = arith.constant 0 : i32
    %c0_i32_0 = arith.constant 0 : i32
    %c0_i32_1 = arith.constant 0 : i32
    return %c0_i32, %arg0, %c0_i32_0 : i32, i32, i32
  }
  func.func @transform_2(%arg0: i32) -> (i32, i32, i32) {
    %c0_i32 = arith.constant 0 : i32
    %c0_i32_0 = arith.constant 0 : i32
    %c0_i32_1 = arith.constant 0 : i32
    return %c0_i32, %arg0, %c0_i32_0 : i32, i32, i32
  }
}

</mosaic_0001>

<bundles_post_ra>
// kernel: tpu_custom_call.1
= control target key start
LH: loop header
LB: loop body
LE: loop exit
PB: predicated region body
PF: predicated region fallthrough
CT: control target
= control target key end

     0   :  { %7 = vsyncpa [#allocation3], 0  ;;  %s182_s0 = inlined_call_operand.hbm [shape: f32[2,8,32], index: 0, kind: input, shape index: {}]   ;;  %s183_s1 = inlined_call_operand.hbm [shape: f32[1,8,32], index: 1, kind: input, shape index: {}]   ;;  %s184_s2 = inlined_call_operand.hbm [shape: f32[2,8,32], index: 2, kind: output, shape index: {}]  }
   0x1   :  { %8 = vsyncpa [#allocation6], 0 }
   0x2   :  { %9 = vsyncpa [#allocation4], 0  ;;  %s14_s11 = sshll.u32 %s182_s0, 4  ;;  %s153_s12 = smov [#allocation2]   ;;  %s15_s11 = int_to_ptr.hbm [resolvable:$true] %s14_s11 }
   0x3   :  { %s16_s13 = sshll.u32 %s153_s12, 4  ;;  %s28_s16 = sshll.u32 %s183_s1, 4  ;;  %s17_s13 = int_to_ptr.vmem [resolvable:$true] %s16_s13  ;;  %s29_s16 = int_to_ptr.hbm [resolvable:$true] %s28_s16 }
   0x4   :  { %s154_s17 = smov 128   ;;  %s155_s18 = smov 8  }
   0x5   :  { %22 = dma.hbm_to_vmem [thread:$0]  %s15_s11, 256, %s17_s13, [#allocation3], %s154_s17, %s154_s17, %s155_s18  }
   0x6   :  { %s156_s19 = smov [#allocation5]  }
   0x7   :  { %s30_s20 = sshll.u32 %s156_s19, 4  ;;  %s31_s20 = int_to_ptr.vmem [resolvable:$true] %s30_s20 }
   0x8   :  { %33 = dma.hbm_to_vmem [thread:$0]  %s29_s16, 128, %s31_s20, [#allocation6]  }
   0x9   :  { %147 = dma.done.wait [#allocation3], 256  }
   0xa   :  { %148 = vsyncadd [#allocation3], 4294967040 }
   0xb   :  { %149 = dma.done.wait [#allocation6], 128  }
   0xc   :  { %150 = vsyncadd [#allocation6], 4294967168  ;;  %s157_s0 = smov [#allocation7]   ;;  %s56_s24 = sshll.u32 %s184_s2, 4  ;;  %v42_v0 = vld [vmem:[#allocation2] sm:$0xff]  ;;  %v44_v1 = vld [vmem:[#allocation5] sm:$0xff]  ;;  %s57_s24 = int_to_ptr.hbm [resolvable:$true] %s56_s24 }
   0xd   :  { %s54_s21 = sshll.u32 %s157_s0, 4  ;;  %vm47_vm0 = vcmask 261120   ;;  %v43_v2 = vld [vmem:[#allocation2 + $0x8] sm:$0xff]  ;;  %v45_v3 = vadd.f32 %v44_v1, %v42_v0  ;;  %s55_s21 = int_to_ptr.vmem [resolvable:$true] %s54_s21 }
   0xe   :  { %v46_v4 = vadd.f32 %v44_v1, %v43_v2 }
   0xf   :  { %48 = vst.msk [vmem:[#allocation7] sm:$0xff] %vm47_vm0, %v45_v3 }
  0x10   :  { %49 = vst.msk [vmem:[#allocation7 + $0x8] sm:$0xff] %vm47_vm0, %v46_v4 }
  0x11   :  { %62 = dma.vmem_to_hbm [thread:$0]  %s55_s21, 256, %s57_s24, [#allocation4], %s154_s17, %s154_s17, %s155_s18  }
  0x12   :  { %151 = dma.done.wait [#allocation4], 256  }
  0x13   :  { %152 = vsyncadd [#allocation4], 4294967040 }
  0x14   :  { %67 = vsyncpa [#allocation3], 1 }
  0x15   :  { %68 = vsyncpa [#allocation6], 1 }
  0x16   :  { %69 = vsyncpa [#allocation4], 1 }

</bundles_post_ra>
